<compile_context>
chip_gen: v7x
topology: tpu7x:2x2x1
jax: 0.10.0
libtpu: 0.0.40
codegen_flags: <defaults>
</compile_context>

<pallas_src>
import math
import jax
import jax.numpy as jnp
from jax import lax
from jax.experimental import pallas as pl
from jax.experimental.pallas import tpu as pltpu


def _round_up(x, m):
    return ((x + m - 1) // m) * m


def _head_compute(x, w1_ref, b1_ref, w2_ref, b2_ref, o_ref):
    # x: [TILE_B, H] (any float dtype) -- cast per-tile to bf16 for the MXU
    x = x.astype(jnp.bfloat16)

    # cls: Linear(H -> 400) on the MXU (bf16 inputs, f32 accumulation), bias in f32
    h = jnp.dot(x, w1_ref[...], preferred_element_type=jnp.float32) + b1_ref[...]

    # gelu: exact (erf-based) in f32, matching torch.nn.GELU() default
    h = 0.5 * h * (1.0 + lax.erf(h * (1.0 / math.sqrt(2.0))))

    # dropout(p=0.5): eval-mode identity (see TODO(synk) above)

    # cls2: Linear(400 -> num_labels) -- padded to 512 x 128 lane-dense shapes
    out = jnp.dot(h.astype(jnp.bfloat16), w2_ref[...],
                  preferred_element_type=jnp.float32) + b2_ref[...]
    o_ref[...] = out.astype(o_ref.dtype)


def _classifier_kernel_flat(x_ref, w1_ref, b1_ref, w2_ref, b2_ref, o_ref):
    # x_ref: [TILE_B, H] -- first H lanes of each flattened [B, S*H] row == CLS token
    _head_compute(x_ref[...], w1_ref, b1_ref, w2_ref, b2_ref, o_ref)


def _classifier_kernel_3d(x_ref, w1_ref, b1_ref, w2_ref, b2_ref, o_ref):
    # Fallback when H % 128 != 0. x_ref: [TILE_B, SEQ_BLK, H]; CLS is seq index 0.
    _head_compute(x_ref[:, 0, :], w1_ref, b1_ref, w2_ref, b2_ref, o_ref)


def pad_params(w1, b1, w2, b2):
    """One-time host-side prep: zero-pad to lane multiples and cast weights to bf16.

    w1: [H, 400], b1: [400], w2: [400, L], b2: [L]  (all f32, [in, out] layout)
    Returns w1p [H, 512] bf16, b1p [1, 512] f32, w2p [512, LP] bf16, b2p [1, LP] f32.
    """
    H, H2 = w1.shape
    L = w2.shape[1]
    H2P = _round_up(H2, 128)  # 400 -> 512
    LP = _round_up(L, 128)    # e.g. 4 -> 128
    w1p = jnp.zeros((H, H2P), jnp.bfloat16).at[:, :H2].set(w1.astype(jnp.bfloat16))
    b1p = jnp.zeros((1, H2P), jnp.float32).at[:, :H2].set(b1.astype(jnp.float32))
    w2p = jnp.zeros((H2P, LP), jnp.bfloat16).at[:H2, :L].set(w2.astype(jnp.bfloat16))
    b2p = jnp.zeros((1, LP), jnp.float32).at[:, :L].set(b2.astype(jnp.float32))
    return w1p, b1p, w2p, b2p


def classifier_head(hidden_states, w1p, b1p, w2p, b2p, num_labels):
    """hidden_states: [B, S, H] (f32 or bf16). Params already padded/cast by pad_params.
    Returns logits [B, num_labels] (f32)."""
    B, S, H = hidden_states.shape
    H2P = w1p.shape[1]
    LP = w2p.shape[1]

    # Batch tiling: large tiles amortize the ~0.35 us/step overhead; for B > 8 always use
    # >= 2 grid steps so dimension_semantics=("parallel",) can shard across both v7x TCs.
    if B <= 8:
        tile_b = B            # single step; block == full batch extent
    else:
        tile_b = min(512, max(8, _round_up((B + 1) // 2, 8)))
    nb = pl.cdiv(B, tile_b)

    if H % 128 == 0:
        # Fast path: free row-major reshape; the first H lanes of each [B, S*H] row are
        # exactly the CLS token, so only tile_b*H elements are DMA'd per grid step.
        x = hidden_states.reshape(B, S * H)
        kernel = _classifier_kernel_flat
        x_spec = pl.BlockSpec((tile_b, H), lambda i: (i, 0))
    else:
        # Fallback (H not lane-aligned): smallest legal seq window containing row 0.
        x = hidden_states
        seq_blk = S if S < 8 else 8
        kernel = _classifier_kernel_3d
        x_spec = pl.BlockSpec((tile_b, seq_blk, H), lambda i: (i, 0, 0))

    out = pl.pallas_call(
        kernel,
        out_shape=jax.ShapeDtypeStruct((B, LP), jnp.float32),
        grid=(nb,),
        in_specs=[
            x_spec,                                        # x (CLS rows only)
            pl.BlockSpec((H, H2P), lambda i: (0, 0)),      # W1 (VMEM-resident)
            pl.BlockSpec((1, H2P), lambda i: (0, 0)),      # b1
            pl.BlockSpec((H2P, LP), lambda i: (0, 0)),     # W2
            pl.BlockSpec((1, LP), lambda i: (0, 0)),       # b2
        ],
        out_specs=pl.BlockSpec((tile_b, LP), lambda i: (i, 0)),
        compiler_params=pltpu.CompilerParams(
            dimension_semantics=("parallel",),
            vmem_limit_bytes=32 * 1024 * 1024,   # needed on v5e (16 MiB scoped default)
        ),
    )(x, w1p, b1p, w2p, b2p)

    # Drop the zero-padded label lanes so downstream softmax/argmax never sees them.
    return out[:, :num_labels]


def init_params(key, hidden_size, num_labels):
    """Deterministic init mimicking torch.nn.Linear's U(-1/sqrt(fan_in), 1/sqrt(fan_in))."""
    k1, k2, k3, k4 = jax.random.split(key, 4)
    bound1 = 1.0 / math.sqrt(hidden_size)
    bound2 = 1.0 / math.sqrt(400)
    # Stored as [in, out] (transposed relative to PyTorch's [out, in]).
    w1 = jax.random.uniform(k1, (hidden_size, 400), jnp.float32, -bound1, bound1)
    b1 = jax.random.uniform(k2, (400,), jnp.float32, -bound1, bound1)
    w2 = jax.random.uniform(k3, (400, num_labels), jnp.float32, -bound2, bound2)
    b2 = jax.random.uniform(k4, (num_labels,), jnp.float32, -bound2, bound2)
    return w1, b1, w2, b2


def reference(hidden_states, w1, b1, w2, b2):
    """Pure-JAX reference mirroring the kernel's bf16 roundings (f32 accumulation)."""
    x = hidden_states[:, 0, :].astype(jnp.bfloat16).astype(jnp.float32)
    w1f = w1.astype(jnp.bfloat16).astype(jnp.float32)
    w2f = w2.astype(jnp.bfloat16).astype(jnp.float32)
    h = x @ w1f + b1
    h = 0.5 * h * (1.0 + lax.erf(h / math.sqrt(2.0)))
    h = h.astype(jnp.bfloat16).astype(jnp.float32)
    return h @ w2f + b2


if __name__ == "__main__":
    key = jax.random.PRNGKey(0)
    k_x, k_p = jax.random.split(key)

    batch, seq, hidden_size, num_labels = 2, 8, 128, 4
    # Input stays f32: the kernel casts only the CLS rows it actually loads.
    hidden_states = jax.random.normal(k_x, (batch, seq, hidden_size), jnp.float32)
    w1, b1, w2, b2 = init_params(k_p, hidden_size, num_labels)

    # One-time host-side padding / bf16 cast (outside the hot path).
    w1p, b1p, w2p, b2p = pad_params(w1, b1, w2, b2)

    head = jax.jit(classifier_head, static_argnames=("num_labels",))
    logits = head(hidden_states, w1p, b1p, w2p, b2p, num_labels=num_labels)
    logits = jax.block_until_ready(logits)

    ref = reference(hidden_states, w1, b1, w2, b2)
    assert logits.shape == (batch, num_labels)
    assert jnp.allclose(logits, ref, atol=1e-2, rtol=1e-2), "mismatch vs reference"

    print("KERNEL_OK")
</pallas_src>

<mosaic_0001>
module attributes {stable_mosaic.version = 11 : i64} {
  func.func @_classifier_kernel_flat(%arg0: i32, %arg1: memref<2x128xf32, #tpu.memory_space<vmem>>, %arg2: memref<128x512xbf16, #tpu.memory_space<vmem>>, %arg3: memref<1x512xf32, #tpu.memory_space<vmem>>, %arg4: memref<512x128xbf16, #tpu.memory_space<vmem>>, %arg5: memref<1x128xf32, #tpu.memory_space<vmem>>, %arg6: memref<2x128xf32, #tpu.memory_space<vmem>>) attributes {dimension_semantics = [#tpu.dimension_semantics<parallel>], iteration_bounds = array<i64: 1>, scalar_prefetch = 0 : i64, scratch_operands = 0 : i64, tpu.core_type = #tpu.core_type<tc>, window_params = [{transform_indices = @transform_0, window_bounds = array<i64: 2, 128>}, {pipeline_mode = #tpu.pipeline_mode<synchronous>, transform_indices = @transform_1, window_bounds = array<i64: 128, 512>}, {pipeline_mode = #tpu.pipeline_mode<synchronous>, transform_indices = @transform_2, window_bounds = array<i64: 1, 512>}, {pipeline_mode = #tpu.pipeline_mode<synchronous>, transform_indices = @transform_3, window_bounds = array<i64: 512, 128>}, {pipeline_mode = #tpu.pipeline_mode<synchronous>, transform_indices = @transform_4, window_bounds = array<i64: 1, 128>}, {transform_indices = @transform_5, window_bounds = array<i64: 2, 128>}]} {
    %c0 = arith.constant 0 : index
    %c0_0 = arith.constant 0 : index
    %0 = vector.load %arg1[%c0, %c0_0] : memref<2x128xf32, #tpu.memory_space<vmem>>, vector<2x128xf32>
    %1 = arith.truncf %0 : vector<2x128xf32> to vector<2x128xbf16>
    %c0_1 = arith.constant 0 : index
    %c0_2 = arith.constant 0 : index
    %2 = vector.load %arg2[%c0_1, %c0_2] : memref<128x512xbf16, #tpu.memory_space<vmem>>, vector<128x512xbf16>
    %cst = arith.constant dense<0.000000e+00> : vector<2x512xf32>
    %3 = tpu.matmul %1, %2, %cst {dimension_numbers = #tpu.dot_dimension_numbers<[1], [0], [0], [1], [0, 0, 1, 1], [], []>} : vector<2x128xbf16>, vector<128x512xbf16>, vector<2x512xf32> -> vector<2x512xf32>
    %c0_3 = arith.constant 0 : index
    %c0_4 = arith.constant 0 : index
    %4 = vector.load %arg3[%c0_3, %c0_4] : memref<1x512xf32, #tpu.memory_space<vmem>>, vector<1x512xf32>
    %5 = vector.broadcast %4 : vector<1x512xf32> to vector<2x512xf32>
    %6 = arith.addf %3, %5 : vector<2x512xf32>
    %cst_5 = arith.constant 5.000000e-01 : f32
    %7 = vector.broadcast %cst_5 : f32 to vector<2x512xf32>
    %8 = arith.mulf %7, %6 : vector<2x512xf32>
    %cst_6 = arith.constant 0.707106769 : f32
    %9 = vector.broadcast %cst_6 : f32 to vector<2x512xf32>
    %10 = arith.mulf %6, %9 : vector<2x512xf32>
    %11 = math.erf %10 : vector<2x512xf32>
    %cst_7 = arith.constant 1.000000e+00 : f32
    %12 = vector.broadcast %cst_7 : f32 to vector<2x512xf32>
    %13 = arith.addf %12, %11 : vector<2x512xf32>
    %14 = arith.mulf %8, %13 : vector<2x512xf32>
    %15 = arith.truncf %14 : vector<2x512xf32> to vector<2x512xbf16>
    %c0_8 = arith.constant 0 : index
    %c0_9 = arith.constant 0 : index
    %16 = vector.load %arg4[%c0_8, %c0_9] : memref<512x128xbf16, #tpu.memory_space<vmem>>, vector<512x128xbf16>
    %cst_10 = arith.constant dense<0.000000e+00> : vector<2x128xf32>
    %17 = tpu.matmul %15, %16, %cst_10 {dimension_numbers = #tpu.dot_dimension_numbers<[1], [0], [0], [1], [0, 0, 1, 1], [], []>} : vector<2x512xbf16>, vector<512x128xbf16>, vector<2x128xf32> -> vector<2x128xf32>
    %c0_11 = arith.constant 0 : index
    %c0_12 = arith.constant 0 : index
    %18 = vector.load %arg5[%c0_11, %c0_12] : memref<1x128xf32, #tpu.memory_space<vmem>>, vector<1x128xf32>
    %19 = vector.broadcast %18 : vector<1x128xf32> to vector<2x128xf32>
    %20 = arith.addf %17, %19 : vector<2x128xf32>
    %c0_13 = arith.constant 0 : index
    %c0_14 = arith.constant 0 : index
    %21 = vector.load %arg6[%c0_13, %c0_14] : memref<2x128xf32, #tpu.memory_space<vmem>>, vector<2x128xf32>
    tpu.vector_store %arg6[%c0_13, %c0_14], %20 {strides = array<i32>} : memref<2x128xf32, #tpu.memory_space<vmem>>, vector<2x128xf32>,
    return
  }
  func.func @transform_0(%arg0: i32) -> (i32, i32) {
    %c0_i32 = arith.constant 0 : i32
    %c0_i32_0 = arith.constant 0 : i32
    return %arg0, %c0_i32 : i32, i32
  }
  func.func @transform_1(%arg0: i32) -> (i32, i32) {
    %c0_i32 = arith.constant 0 : i32
    %c0_i32_0 = arith.constant 0 : i32
    %c0_i32_1 = arith.constant 0 : i32
    return %c0_i32, %c0_i32_0 : i32, i32
  }
  func.func @transform_2(%arg0: i32) -> (i32, i32) {
    %c0_i32 = arith.constant 0 : i32
    %c0_i32_0 = arith.constant 0 : i32
    %c0_i32_1 = arith.constant 0 : i32
    return %c0_i32, %c0_i32_0 : i32, i32
  }
  func.func @transform_3(%arg0: i32) -> (i32, i32) {
    %c0_i32 = arith.constant 0 : i32
    %c0_i32_0 = arith.constant 0 : i32
    %c0_i32_1 = arith.constant 0 : i32
    return %c0_i32, %c0_i32_0 : i32, i32
  }
  func.func @transform_4(%arg0: i32) -> (i32, i32) {
    %c0_i32 = arith.constant 0 : i32
    %c0_i32_0 = arith.constant 0 : i32
    %c0_i32_1 = arith.constant 0 : i32
    return %c0_i32, %c0_i32_0 : i32, i32
  }
  func.func @transform_5(%arg0: i32) -> (i32, i32) {
    %c0_i32 = arith.constant 0 : i32
    %c0_i32_0 = arith.constant 0 : i32
    return %arg0, %c0_i32 : i32, i32
  }
}

</mosaic_0001>

<bundles_post_ra>
// kernel: classifier_head.1
= control target key start
LH: loop header
LB: loop body
LE: loop exit
PB: predicated region body
PF: predicated region fallthrough
CT: control target
= control target key end

     0   :  { %10 = vsyncpa [#allocation3], 0  ;;  %s1092_s0 = inlined_call_operand.vmem [shape: f32[2,1024], index: 0, kind: input, shape index: {}]   ;;  %s1093_s1 = inlined_call_operand.hbm [shape: bf16[128,512], index: 1, kind: input, shape index: {}]   ;;  %s1094_s2 = inlined_call_operand.vmem [shape: f32[1,512], index: 2, kind: input, shape index: {}]   ;;  %s1095_s3 = inlined_call_operand.hbm [shape: bf16[512,128], index: 3, kind: input, shape index: {}]   ;;  %s1096_s4 = inlined_call_operand.vmem [shape: f32[1,128], index: 4, kind: input, shape index: {}]   ;;  %s1097_s5 = inlined_call_operand.hbm [shape: f32[2,128], index: 5, kind: output, shape index: {}]  }
   0x1   :  { %11 = vsyncpa [#allocation6], 0 }
   0x2   :  { %12 = vsyncpa [#allocation4], 0  ;;  %s1009_s18 = smov [#allocation2]   ;;  %s937_s22 = scalar_lea.hbm %s1093_s1, 4096 }
   0x3   :  { %s20_s19 = sshll.u32 %s1009_s18, 4  ;;  %p938_p0 = scmp.ne.s32.totalorder %s1093_s1, %s937_s22  ;;  %s21_s19 = int_to_ptr.vmem [resolvable:$true] %s20_s19 }
   0x4   :  { %p941_p1 = scmp.lt.u32.totalorder %s937_s22, %s1093_s1 }
   0x6   :  { %p943_p2 = pnand %p941_p1, %p938_p0 }
   0x8   :  { %946 = shalt.err (!%p943_p2)
}
   0x9   :  { %s947_s27 = scalar_lea.vmem %s21_s19, 4096  ;;  %p952_p4 = scmp.lt.s32.totalorder %s21_s19, %s21_s19 }
   0xa   :  { %p948_p3 = scmp.ne.s32.totalorder %s21_s19, %s947_s27  ;;  %p953_p5 = scmp.lt.s32.totalorder %s947_s27, %s947_s27 }
   0xc   :  { %p954_p6 = por %p953_p5, %p952_p4 }
   0xe   :  { %p955_p7 = pnand %p954_p6, %p948_p3 }
  0x10   :  { %958 = shalt.err (!%p955_p7)
}
  0x11   :  { %s1010_s28 = smov 256   ;;  %s1011_s29 = smov 16  }
  0x12   :  { %26 = dma.hbm_to_vmem [thread:$0]  %s1093_s1, 4096, %s21_s19, [#allocation3], %s1010_s28, %s1010_s28, %s1011_s29  }
  0x13   :  { %s1012_s7 = smov [#allocation5]   ;;  %s959_s11 = scalar_lea.hbm %s1095_s3, 4096 }
  0x14   :  { %s34_s8 = sshll.u32 %s1012_s7, 4  ;;  %p960_p8 = scmp.ne.s32.totalorder %s1095_s3, %s959_s11  ;;  %s35_s8 = int_to_ptr.vmem [resolvable:$true] %s34_s8 }
  0x15   :  { %p963_p9 = scmp.lt.u32.totalorder %s959_s11, %s1095_s3 }
  0x17   :  { %p965_p10 = pnand %p963_p9, %p960_p8 }
  0x19   :  { %968 = shalt.err (!%p965_p10)
}
  0x1a   :  { %s969_s16 = scalar_lea.vmem %s35_s8, 4096  ;;  %p974_p12 = scmp.lt.s32.totalorder %s35_s8, %s35_s8 }
  0x1b   :  { %p970_p11 = scmp.ne.s32.totalorder %s35_s8, %s969_s16  ;;  %p975_p13 = scmp.lt.s32.totalorder %s969_s16, %s969_s16 }
  0x1d   :  { %p976_p0 = por %p975_p13, %p974_p12 }
  0x1f   :  { %p977_p1 = pnand %p976_p0, %p970_p11 }
  0x21   :  { %980 = shalt.err (!%p977_p1)
}
  0x22   :  { %s1013_s1 = smov 64   ;;  %s1014_s17 = smov 4  }
  0x23   :  { %40 = dma.hbm_to_vmem [thread:$0]  %s1095_s3, 4096, %s35_s8, [#allocation6], %s1013_s1, %s1013_s1, %s1014_s17  }
  0x24   :  { %1003 = dma.done.wait [#allocation3], 4096  }
  0x25   :  { %1004 = vsyncadd [#allocation3], 4294963200 }
  0x26   :  { %1005 = dma.done.wait [#allocation6], 4096  }
  0x27   :  { %1006 = vsyncadd [#allocation6], 4294963200  ;;  %v1015_v0 = vmov 0   ;;  %v849_v1 = vld [vmem:[#allocation2 + $0x4] ss:$16 sps:$4 sm:$0xff]   ;;  %v901_v39 = vld [vmem:[#allocation5 + $0x48] sm:$0xff]  }
  0x28   :  { %298 = vmatprep.mubr.bf16.mxu0 %v1015_v0  ;;  %339 = vmatprep.mubr.bf16.mxu1 %v1015_v0  ;;  %v851_v2 = vld [vmem:[#allocation2 + $0xc] ss:$16 sps:$4 sm:$0xff]   ;;  %v853_v3 = vld [vmem:[#allocation2] ss:$16 sps:$4 sm:$0xff]   ;;  %v854_v4 = vld [vmem:[#allocation2 + $0x8] ss:$16 sps:$4 sm:$0xff]  }
  0x29   :  { %266 = vmatprep.subr.bf16.mxu0 %v849_v1  ;;  %307 = vmatprep.subr.bf16.mxu1 %v851_v2  ;;  %v855_v5 = vld [vmem:[#allocation2 + $0x24] ss:$16 sps:$4 sm:$0xff]   ;;  %v857_v6 = vld [vmem:[#allocation2 + $0x2c] ss:$16 sps:$4 sm:$0xff]   ;;  %v859_v7 = vld [vmem:[#allocation2 + $0x20] ss:$16 sps:$4 sm:$0xff]  }
  0x2a   :  { %267 = vmatpush1.bf16.msra.mxu0 %v853_v3  ;;  %308 = vmatpush1.bf16.msra.mxu1 %v854_v4  ;;  %v860_v8 = vld [vmem:[#allocation2 + $0x28] ss:$16 sps:$4 sm:$0xff]   ;;  %v861_v9 = vld [vmem:[#allocation2 + $0x44] ss:$16 sps:$4 sm:$0xff]   ;;  %v863_v10 = vld [vmem:[#allocation2 + $0x4c] ss:$16 sps:$4 sm:$0xff]   ;;  %v86_v3 = vlaneseq }
  0x2b   :  { %268 = vmatprep.subr.bf16.mxu0 %v855_v5  ;;  %309 = vmatprep.subr.bf16.mxu1 %v857_v6  ;;  %v865_v11 = vld [vmem:[#allocation2 + $0x40] ss:$16 sps:$4 sm:$0xff]   ;;  %v866_v12 = vld [vmem:[#allocation2 + $0x48] ss:$16 sps:$4 sm:$0xff]   ;;  %v867_v13 = vld [vmem:[#allocation2 + $0x64] ss:$16 sps:$4 sm:$0xff]  }
  0x2c   :  { %v869_v14 = vld [vmem:[#allocation2 + $0x6c] ss:$16 sps:$4 sm:$0xff]   ;;  %v871_v15 = vld [vmem:[#allocation2 + $0x60] ss:$16 sps:$4 sm:$0xff]   ;;  %v872_v16 = vld [vmem:[#allocation2 + $0x68] ss:$16 sps:$4 sm:$0xff]  }
  0x2d   :  { %v873_v17 = vld [vmem:[#allocation2 + $0x84] ss:$16 sps:$4 sm:$0xff]   ;;  %v875_v18 = vld [vmem:[#allocation2 + $0x8c] ss:$16 sps:$4 sm:$0xff]   ;;  %v877_v19 = vld [vmem:[#allocation2 + $0x80] ss:$16 sps:$4 sm:$0xff]  }
  0x2e   :  { %269 = vmatpush1.bf16.msra.mxu0 %v859_v7  ;;  %310 = vmatpush1.bf16.msra.mxu1 %v860_v8  ;;  %v878_v20 = vld [vmem:[#allocation2 + $0x88] ss:$16 sps:$4 sm:$0xff]   ;;  %v879_v21 = vld [vmem:[#allocation2 + $0xa4] ss:$16 sps:$4 sm:$0xff]   ;;  %v881_v22 = vld [vmem:[#allocation2 + $0xac] ss:$16 sps:$4 sm:$0xff]  }
  0x2f   :  { %270 = vmatprep.subr.bf16.mxu0 %v861_v9  ;;  %311 = vmatprep.subr.bf16.mxu1 %v863_v10  ;;  %v883_v23 = vld [vmem:[#allocation2 + $0xa0] ss:$16 sps:$4 sm:$0xff]   ;;  %v884_v24 = vld [vmem:[#allocation2 + $0xa8] ss:$16 sps:$4 sm:$0xff]   ;;  %v885_v25 = vld [vmem:[#allocation2 + $0xc4] ss:$16 sps:$4 sm:$0xff]  }
  0x30   :  { %v887_v26 = vld [vmem:[#allocation2 + $0xcc] ss:$16 sps:$4 sm:$0xff]   ;;  %v889_v27 = vld [vmem:[#allocation2 + $0xc0] ss:$16 sps:$4 sm:$0xff]   ;;  %v890_v28 = vld [vmem:[#allocation2 + $0xc8] ss:$16 sps:$4 sm:$0xff]  }
  0x31   :  { %v891_v29 = vld [vmem:[#allocation2 + $0xe4] ss:$16 sps:$4 sm:$0xff]   ;;  %v893_v30 = vld [vmem:[#allocation2 + $0xec] ss:$16 sps:$4 sm:$0xff]   ;;  %v895_v31 = vld [vmem:[#allocation2 + $0xe0] ss:$16 sps:$4 sm:$0xff]  }
  0x32   :  { %271 = vmatpush1.bf16.msra.mxu0 %v865_v11  ;;  %312 = vmatpush1.bf16.msra.mxu1 %v866_v12  ;;  %v896_v32 = vld [vmem:[#allocation2 + $0xe8] ss:$16 sps:$4 sm:$0xff]   ;;  %v50_v33 = vld [vmem:[%s1092_s0] sm:$0x3]  ;;  %v905_v43 = vld [vmem:[#allocation5 + $0x50] sm:$0xff]   ;;  %v87_v4 = vshrl.u32 %v86_v3, 7 }
  0x33   :  { %272 = vmatprep.subr.bf16.mxu0 %v867_v13  ;;  %313 = vmatprep.subr.bf16.mxu1 %v869_v14  ;;  %v897_v34 = vld [vmem:[#allocation5 + $0x40] sm:$0xff]   ;;  %v51_v38 = vpack.c.bf16 %v50_v33, %v50_v33  ;;  %v902_v40 = vld [vmem:[#allocation5 + $0xc8] sm:$0xff]   ;;  %v906_v44 = vld [vmem:[#allocation5 + $0xd0] sm:$0xff]   ;;  %s1016_s23 = smov [#allocation7]  }
  0x34   :  { %v898_v35 = vld [vmem:[#allocation5 + $0xc0] sm:$0xff]   ;;  %v903_v41 = vld [vmem:[#allocation5 + $0x8] sm:$0xff]   ;;  %v907_v45 = vld [vmem:[#allocation5 + $0x10] sm:$0xff]   ;;  %v88_v5 = vsub.s32 0, %v87_v4  ;;  %v96_v6 = vsub.s32 2, %v87_v4  ;;  %v92_v8 = vsub.s32 1, %v87_v4 }
  0x35   :  { %v899_v36 = vld [vmem:[#allocation5] sm:$0xff]   ;;  %v904_v42 = vld [vmem:[#allocation5 + $0x88] sm:$0xff]   ;;  %v908_v46 = vld [vmem:[#allocation5 + $0x90] sm:$0xff]   ;;  %v100_v9 = vsub.s32 3, %v87_v4  ;;  %s722_s24 = sshll.u32 %s1016_s23, 4  ;;  %s723_s24 = int_to_ptr.vmem [resolvable:$true] %s722_s24 }
  0x36   :  { %273 = vmatpush1.bf16.msra.mxu0 %v871_v15  ;;  %314 = vmatpush1.bf16.msra.mxu1 %v872_v16  ;;  %v900_v37 = vld [vmem:[#allocation5 + $0x80] sm:$0xff]   ;;  %v909_v47 = vld [vmem:[#allocation5 + $0x58] sm:$0xff]   ;;  %v917_v55 = vld [vmem:[#allocation5 + $0x68] sm:$0xff]   ;;  %s981_s25 = scalar_lea.vmem %s723_s24, 32  ;;  %p986_p3 = scmp.lt.s32.totalorder %s723_s24, %s723_s24 }
  0x37   :  { %274 = vmatprep.subr.bf16.mxu0 %v873_v17  ;;  %315 = vmatprep.subr.bf16.mxu1 %v875_v18  ;;  %v910_v48 = vld [vmem:[#allocation5 + $0xd8] sm:$0xff]   ;;  %v913_v51 = vld [vmem:[#allocation5 + $0x60] sm:$0xff]   ;;  %v918_v56 = vld [vmem:[#allocation5 + $0xe8] sm:$0xff]   ;;  %p982_p2 = scmp.ne.s32.totalorder %s723_s24, %s981_s25  ;;  %p987_p4 = scmp.lt.s32.totalorder %s981_s25, %s981_s25 }
  0x38   :  { %v911_v49 = vld [vmem:[#allocation5 + $0x18] sm:$0xff]   ;;  %v914_v52 = vld [vmem:[#allocation5 + $0xe0] sm:$0xff]   ;;  %v919_v57 = vld [vmem:[#allocation5 + $0x28] sm:$0xff]  }
  0x39   :  { %v912_v50 = vld [vmem:[#allocation5 + $0x98] sm:$0xff]   ;;  %v915_v53 = vld [vmem:[#allocation5 + $0x20] sm:$0xff]   ;;  %v920_v58 = vld [vmem:[#allocation5 + $0xa8] sm:$0xff]   ;;  %p988_p5 = por %p987_p4, %p986_p3 }
  0x3a   :  { %275 = vmatpush1.bf16.msra.mxu0 %v877_v19  ;;  %316 = vmatpush1.bf16.msra.mxu1 %v878_v20  ;;  %v916_v54 = vld [vmem:[#allocation5 + $0xa0] sm:$0xff]   ;;  %v921_v59 = vld [vmem:[#allocation5 + $0x70] sm:$0xff]   ;;  %v925_v63 = vld [vmem:[#allocation5 + $0x78] sm:$0xff]  }
  0x3b   :  { %276 = vmatprep.subr.bf16.mxu0 %v879_v21  ;;  %317 = vmatprep.subr.bf16.mxu1 %v881_v22  ;;  %v922_v60 = vld [vmem:[#allocation5 + $0xf0] sm:$0xff]   ;;  %v926_v0 = vld [vmem:[#allocation5 + $0xf8] sm:$0xff]   ;;  %v84_v7 = vld [vmem:[%s1094_s2] sm:$0xf]  ;;  %p989_p6 = pnand %p988_p5, %p982_p2 }
  0x3c   :  { %v923_v61 = vld [vmem:[#allocation5 + $0x30] sm:$0xff]   ;;  %v927_v1 = vld [vmem:[#allocation5 + $0x38] sm:$0xff]   ;;  %v89_v10 = vrot.slane %v84_v7, %v88_v5  ;;  %v97_v11 = vrot.slane %v84_v7, %v96_v6  ;;  %v93_v12 = vrot.slane %v84_v7, %v92_v8  ;;  %v101_v13 = vrot.slane %v84_v7, %v100_v9 }
  0x3d   :  { %v924_v62 = vld [vmem:[#allocation5 + $0xb0] sm:$0xff]   ;;  %v928_v2 = vld [vmem:[#allocation5 + $0xb8] sm:$0xff]  }
  0x3e   :  { %277 = vmatpush1.bf16.msra.mxu0 %v883_v23  ;;  %318 = vmatpush1.bf16.msra.mxu1 %v884_v24 }
  0x3f   :  { %278 = vmatprep.subr.bf16.mxu0 %v885_v25  ;;  %319 = vmatprep.subr.bf16.mxu1 %v887_v26 }
  0x42   :  { %279 = vmatpush1.bf16.msra.mxu0 %v889_v27  ;;  %320 = vmatpush1.bf16.msra.mxu1 %v890_v28 }
  0x43   :  { %280 = vmatprep.subr.bf16.mxu0 %v891_v29  ;;  %321 = vmatprep.subr.bf16.mxu1 %v893_v30 }
  0x46   :  { %281 = vmatpush1.bf16.msra.mxu0 %v895_v31  ;;  %322 = vmatpush1.bf16.msra.mxu1 %v896_v32 }
  0x47   :  { %797 = vmatprep.subr.bf16.mxu0 %v897_v34  ;;  %819 = vmatprep.subr.bf16.mxu1 %v898_v35 }
  0x49   :  { %299 = vmatmul.mubr.bf16.vlgmr.msra.gmra.mrb[0].mxu0 %v51_v38  ;;  %340 = vmatmul.mubr.bf16.vlgmr.msra.gmra.mrb[0].mxu1 %v51_v38 }
  0x4a   :  { %798 = vmatpush3.bf16.msra.mxu0 %v899_v36  ;;  %820 = vmatpush3.bf16.msra.mxu1 %v900_v37 }
  0x4b   :  { %799 = vmatprep.subr.bf16.mxu0 %v901_v39  ;;  %821 = vmatprep.subr.bf16.mxu1 %v902_v40 }
  0x4e   :  { %800 = vmatpush3.bf16.msra.mxu0 %v903_v41  ;;  %822 = vmatpush3.bf16.msra.mxu1 %v904_v42 }
  0x4f   :  { %801 = vmatprep.subr.bf16.mxu0 %v905_v43  ;;  %823 = vmatprep.subr.bf16.mxu1 %v906_v44 }
  0x52   :  { %802 = vmatpush3.bf16.msra.mxu0 %v907_v45  ;;  %824 = vmatpush3.bf16.msra.mxu1 %v908_v46 }
  0x53   :  { %803 = vmatprep.subr.bf16.mxu0 %v909_v47  ;;  %825 = vmatprep.subr.bf16.mxu1 %v910_v48 }
  0x56   :  { %804 = vmatpush3.bf16.msra.mxu0 %v911_v49  ;;  %826 = vmatpush3.bf16.msra.mxu1 %v912_v50 }
  0x57   :  { %805 = vmatprep.subr.bf16.mxu0 %v913_v51  ;;  %827 = vmatprep.subr.bf16.mxu1 %v914_v52  ;;  %v764_v52 = vld [vmem:[%s1096_s4] ss:$0 sm:$0xff] }
  0x5a   :  { %806 = vmatpush3.bf16.msra.mxu0 %v915_v53  ;;  %828 = vmatpush3.bf16.msra.mxu1 %v916_v54 }
  0x5b   :  { %807 = vmatprep.subr.bf16.mxu0 %v917_v55  ;;  %829 = vmatprep.subr.bf16.mxu1 %v918_v56 }
  0x5e   :  { %808 = vmatpush3.bf16.msra.mxu0 %v919_v57  ;;  %830 = vmatpush3.bf16.msra.mxu1 %v920_v58 }
  0x5f   :  { %809 = vmatprep.subr.bf16.mxu0 %v921_v59  ;;  %831 = vmatprep.subr.bf16.mxu1 %v922_v60 }
  0x62   :  { %810 = vmatpush3.bf16.msra.mxu0 %v923_v61  ;;  %832 = vmatpush3.bf16.msra.mxu1 %v924_v62 }
  0x63   :  { %811 = vmatprep.subr.bf16.mxu0 %v925_v63  ;;  %833 = vmatprep.subr.bf16.mxu1 %v926_v0 }
  0x66   :  { %812 = vmatpush3.bf16.msra.mxu0 %v927_v1  ;;  %834 = vmatpush3.bf16.msra.mxu1 %v928_v2 }
 0x11c   :  { %v300_v14 = vpop.f32.mrb[0].mxu0  ;;  %v341_v15 = vpop.f32.mrb[0].mxu1 }
 0x11d   :  { %v301_v16 = vadd.f32 %v300_v14, %v89_v10  ;;  %v342_v17 = vadd.f32 %v341_v15, %v97_v11  ;;  %v302_v18 = vpop.f32.mrb[1].mxu0  ;;  %v343_v19 = vpop.f32.mrb[1].mxu1 }
 0x11e   :  { %v303_v20 = vadd.f32 %v302_v18, %v93_v12  ;;  %v344_v21 = vadd.f32 %v343_v19, %v101_v13  ;;  %v304_v22 = vpop.f32.mrb[2].mxu0  ;;  %v345_v23 = vpop.f32.mrb[2].mxu1 }
 0x11f   :  { %v352_v24 = vmul.f32 0.70710677, %v301_v16  ;;  %v354_v25 = vmul.f32 0.70710677, %v342_v17  ;;  %v305_v28 = vpop.f32.mrb[3].mxu0  ;;  %v346_v29 = vpop.f32.mrb[3].mxu1 }
 0x120   :  { %v353_v26 = vmul.f32 0.70710677, %v303_v20  ;;  %v355_v27 = vmul.f32 0.70710677, %v344_v21  ;;  %v348_v34 = vmul.f32 0.5, %v301_v16  ;;  %v350_v37 = vmul.f32 0.5, %v342_v17 }
 0x121   :  { %929 = verf.f32 %v352_v24  ;;  %v349_v38 = vmul.f32 0.5, %v303_v20  ;;  %v351_v41 = vmul.f32 0.5, %v344_v21 }
 0x122   :  { %931 = verf.f32 %v354_v25 }
 0x123   :  { %933 = verf.f32 %v353_v26 }
 0x124   :  { %935 = verf.f32 %v355_v27 }
 0x12b   :  { %v930_v30 = vpop.eup %929 }
 0x12c   :  { %v932_v31 = vpop.eup %931  ;;  %v360_v32 = vadd.f32 1.0, %v930_v30 }
 0x12d   :  { %v934_v33 = vpop.eup %933  ;;  %v362_v35 = vadd.f32 1.0, %v932_v31 }
 0x12e   :  { %v936_v36 = vpop.eup %935  ;;  %v361_v39 = vadd.f32 1.0, %v934_v33  ;;  %v364_v40 = vmul.f32 %v360_v32, %v348_v34 }
 0x12f   :  { %v363_v42 = vadd.f32 1.0, %v936_v36  ;;  %v366_v43 = vmul.f32 %v362_v35, %v350_v37 }
 0x130   :  { %v365_v44 = vmul.f32 %v361_v39, %v349_v38  ;;  %v368_v47 = vpack.c.bf16 %v364_v40, %v364_v40 }
 0x131   :  { %v367_v45 = vmul.f32 %v363_v42, %v351_v41  ;;  %v370_v49 = vpack.c.bf16 %v366_v43, %v366_v43 }
 0x132   :  { %v369_v46 = vpack.c.bf16 %v365_v44, %v365_v44 }
 0x133   :  { %v371_v48 = vpack.c.bf16 %v367_v45, %v367_v45 }
 0x134   :  { %667 = vmatprep.mubr.bf16.mxu0 %v369_v46 }
 0x135   :  { %707 = vmatprep.mubr.bf16.mxu1 %v371_v48  ;;  %668 = vmatmul.mubr.bf16.vlgmr.msra.gmra.mrb[4].mxu0 %v368_v47 }
 0x136   :  { %708 = vmatmul.mubr.bf16.vlgmr.msra.gmra.mrb[4].mxu1 %v370_v49 }
 0x208   :  { %v813_v50 = vpop.f32.mrb[4].mxu0 }
 0x209   :  { %v835_v51 = vpop.f32.mrb[4].mxu1  ;;  %v814_v53 = vpop.f32.mrb[5].mxu0 }
 0x20a   :  { %v815_v54 = vadd.f32 %v814_v53, %v813_v50  ;;  %v836_v55 = vpop.f32.mrb[5].mxu1  ;;  %v816_v56 = vpop.f32.mrb[6].mxu0 }
 0x20b   :  { %v837_v57 = vadd.f32 %v836_v55, %v835_v51  ;;  %v838_v58 = vpop.f32.mrb[6].mxu1  ;;  %v817_v59 = vpop.f32.mrb[7].mxu0 }
 0x20c   :  { %v670_v60 = vadd.f32 %v815_v54, %v764_v52  ;;  %v839_v61 = vpop.f32.mrb[7].mxu1 }
 0x20e   :  { %v710_v62 = vadd.f32 %v837_v57, %v670_v60 }
 0x210   :  { %715 = vst [vmem:[#allocation7] sm:$0x3] %v710_v62 }
 0x211   :  { %992 = shalt.err (!%p989_p6)
}
 0x212   :  { %s993_s27 = scalar_lea.hbm %s1097_s5, 32 }
 0x213   :  { %p994_p7 = scmp.ne.s32.totalorder %s1097_s5, %s993_s27  ;;  %p997_p8 = scmp.lt.u32.totalorder %s993_s27, %s1097_s5 }
 0x215   :  { %p999_p9 = pnand %p997_p8, %p994_p7 }
 0x217   :  { %1002 = shalt.err (!%p999_p9)
}
 0x218   :  { %725 = dma.vmem_to_hbm [thread:$0]  %s723_s24, 32, %s1097_s5, [#allocation4]  }
 0x219   :  { %1007 = dma.done.wait [#allocation4], 32  }
 0x21a   :  { %1008 = vsyncadd [#allocation4], 4294967264 }
 0x21b   :  { %729 = vsyncpa [#allocation3], 1 }
 0x21c   :  { %730 = vsyncpa [#allocation6], 1 }
 0x21d   :  { %731 = vsyncpa [#allocation4], 1 }

</bundles_post_ra>
